<compile_context>
chip_gen: v7x
topology: tpu7x:2x2x1
jax: 0.10.0
libtpu: 0.0.40
codegen_flags: <defaults>
</compile_context>

<pallas_src>
import math

import jax
import jax.numpy as jnp
from jax.experimental import pallas as pl
from jax.experimental.pallas import tpu as pltpu


def _masked_relu_kernel(x_ref, m_ref, o_ref):
    # x_ref/o_ref: (TM, TN) tile. m_ref: (R, TN) with R == 1 (batch-broadcast row) or a
    # divisor of TM (channel-folded mask rows, repeated once per batch element in the tile).
    x = x_ref[...]
    m = m_ref[...]
    if m.shape[0] not in (1, x.shape[0]):
        m = jnp.tile(m, (x.shape[0] // m.shape[0], 1))   # static trace-time repeat
    # relu(x)*m + x*(1-m)  ==  x - m*min(x, 0)   (3 VPU ops, exact for any mask value)
    o_ref[...] = x - m * jnp.minimum(x, 0.0)


def _cdiv(a, b):
    return -(-a // b)


def _round_up(v, unit):
    return _cdiv(v, unit) * unit


def _tile(dim, unit, cap):
    """Block size along one axis: full dim if it fits under `cap` (always legal), else a
    balanced multiple of `unit` <= cap; ragged tails are handled by the cdiv grid + masking."""
    cap = max(unit, (cap // unit) * unit)
    if dim <= cap:
        return dim
    nblocks = _cdiv(dim, cap)
    return _round_up(_cdiv(dim, nblocks), unit)


def _sublane_unit(dtype):
    return {4: 8, 2: 16, 1: 32}.get(jnp.dtype(dtype).itemsize, 8)


def _vmem_capacity_bytes():
    try:
        return int(pltpu.get_tpu_info().vmem_capacity_bytes)
    except Exception:
        return 128 << 20          # conservative default (v5e/v6e-class part)


def _pick_fold(n, chw, sublane):
    """Rows-per-batch R (divisor of CHW): fold feature rows into the sublane axis when the
    batch alone cannot fill a vreg, while keeping the lane dim a wide multiple of 128."""
    if n >= sublane or chw < 512:
        return 1
    for r in range(2, min(chw // 256, 4096) + 1):
        if chw % r:
            continue
        cols = chw // r
        if cols % 128:
            continue
        if n * r >= sublane:
            return r              # smallest qualifying R keeps the lane dim widest
    return 1


def relu_masked_spgrad_relay_forward(x, alpha_mask, alpha_aux=None):
    """Forward of ReLU_masked_spgrad_relay.

    x:          (N, *feat) activations.
    alpha_mask: (*feat) relu/pass mask (STE forward returns it unchanged); broadcast over N.
    alpha_aux:  unused in the forward pass (softplus STE is backward-only).
    """
    del alpha_aux
    n = x.shape[0]
    feat_shape = x.shape[1:]
    assert tuple(alpha_mask.shape) == tuple(feat_shape), "mask must match x.shape[1:]"
    chw = int(math.prod(feat_shape)) if feat_shape else 1
    dtype = x.dtype
    itemsize = jnp.dtype(dtype).itemsize
    sublane = _sublane_unit(dtype)

    # ---- hardware-aware budgets ------------------------------------------------------
    vmem_cap = _vmem_capacity_bytes()
    v7x_like = vmem_cap <= (64 << 20)                 # 2 TCs, 64 MiB VMEM, 3.2 TB/s HBM
    tile_bytes = (8 << 20) if v7x_like else (4 << 20)
    tile_elems = max(tile_bytes // itemsize, 8 * 128)
    vmem_budget_cap = max(32 << 20, min(48 << 20, vmem_cap - (16 << 20)))

    # ---- 2-D lane-dense view (rows = N*R, cols = CHW/R) --------------------------------
    r_fold = _pick_fold(n, chw, sublane)
    rows, cols = n * r_fold, chw // r_fold
    x2d = x.reshape(rows, cols)
    m2d = alpha_mask.reshape(r_fold, cols).astype(dtype)   # exact: mask values are {0, 1}

    # ---- tile selection ----------------------------------------------------------------
    if r_fold == 1:
        unit_m = sublane
    else:
        unit_m = (sublane * r_fold) // math.gcd(sublane, r_fold)   # multiple of both
    tn_cap = max(128, ((tile_elems // unit_m) // 128) * 128)
    tn = _tile(cols, 128, tn_cap)
    tm_cap = max(unit_m, ((tile_elems // tn) // unit_m) * unit_m)
    tm = _tile(rows, unit_m, tm_cap)

    # Keep the double-buffered working set (x, out, mask blocks) under the VMEM budget.
    def _need(tm_, tn_):
        return (4 * tm_ + 2 * r_fold) * tn_ * itemsize + (1 << 20)

    while _need(tm, tn) > vmem_budget_cap:
        if tn > 128:
            tn = max(128, _round_up(_cdiv(tn, 2), 128))
        elif tm > unit_m:
            tm = max(unit_m, _round_up(_cdiv(tm, 2), unit_m))
        else:
            break

    gcols, grows = _cdiv(cols, tn), _cdiv(rows, tm)

    # v7x: a big single-block grid would leave one TensorCore (half the HBM BW) idle.
    if v7x_like and gcols * grows == 1 and rows * cols * itemsize > (1 << 20):
        if cols >= 256:
            tn = max(128, _round_up(_cdiv(cols, 2), 128))
        elif rows >= 2 * unit_m:
            tm = max(unit_m, _round_up(_cdiv(rows, 2), unit_m))
        gcols, grows = _cdiv(cols, tn), _cdiv(rows, tm)

    vmem_limit = int(min(max(32 << 20, _need(tm, tn)), vmem_budget_cap))

    out2d = pl.pallas_call(
        _masked_relu_kernel,
        out_shape=jax.ShapeDtypeStruct((rows, cols), dtype),
        grid_spec=pltpu.PrefetchScalarGridSpec(
            num_scalar_prefetch=0,
            grid=(gcols, grows),                                  # rows inner: mask block
            in_specs=[                                            # index constant per step
                pl.BlockSpec((tm, tn), lambda j, i: (i, j)),      # x tile
                pl.BlockSpec((r_fold, tn), lambda j, i: (0, j)),  # shared mask rows
            ],
            out_specs=pl.BlockSpec((tm, tn), lambda j, i: (i, j)),
        ),
        compiler_params=pltpu.CompilerParams(
            dimension_semantics=("parallel", "parallel"),
            vmem_limit_bytes=vmem_limit,
        ),
    )(x2d, m2d)

    return out2d.reshape(x.shape)


if __name__ == "__main__":
    key = jax.random.PRNGKey(0)
    k_x, k_aux, k_mask, k_x2, k_mask2 = jax.random.split(key, 5)

    # Shapes consistent with the module: mask has x.shape[1:].
    N, C, H, W = 2, 4, 16, 16
    x = jax.random.normal(k_x, (N, C, H, W), dtype=jnp.float32)

    # Module init (init_w_aux): alpha_aux ~ U(0, 1) (backward-only), alpha_mask = 1.0.
    alpha_aux = jax.random.uniform(k_aux, (C, H, W), dtype=jnp.float32, minval=0.0, maxval=1.0)
    alpha_mask_init = jnp.ones((C, H, W), dtype=jnp.float32)
    # A mixed binary mask, as produced by update_mask() during training.
    alpha_mask_mixed = (jax.random.uniform(k_mask, (C, H, W)) > 0.5).astype(jnp.float32)

    def ref(xv, m):
        return jnp.maximum(xv, 0.0) * m[None] + xv * (1.0 - m[None])

    for mask in (alpha_mask_init, alpha_mask_mixed):
        out = jax.block_until_ready(
            relu_masked_spgrad_relay_forward(x, mask, alpha_aux=alpha_aux))
        assert out.shape == x.shape and out.dtype == x.dtype
        assert jnp.allclose(out, ref(x, mask), atol=1e-6), "mismatch vs reference"

    # Odd (non-128-multiple) feature shape to exercise the shape-robust path.
    N2, C2, H2, W2 = 2, 3, 10, 10
    x_odd = jax.random.normal(k_x2, (N2, C2, H2, W2), dtype=jnp.float32)
    mask_odd = (jax.random.uniform(k_mask2, (C2, H2, W2)) > 0.5).astype(jnp.float32)
    out_odd = jax.block_until_ready(relu_masked_spgrad_relay_forward(x_odd, mask_odd))
    assert out_odd.shape == x_odd.shape and out_odd.dtype == x_odd.dtype
    assert jnp.allclose(out_odd, ref(x_odd, mask_odd), atol=1e-6), "mismatch (odd shape)"

    print("KERNEL_OK")
</pallas_src>

<mosaic_0001>
module attributes {stable_mosaic.version = 11 : i64} {
  func.func @_masked_relu_kernel(%arg0: i32, %arg1: i32, %arg2: memref<8x256xf32, #tpu.memory_space<vmem>>, %arg3: memref<4x256xf32, #tpu.memory_space<vmem>>, %arg4: memref<8x256xf32, #tpu.memory_space<vmem>>) attributes {dimension_semantics = [#tpu.dimension_semantics<parallel>, #tpu.dimension_semantics<parallel>], iteration_bounds = array<i64: 1, 1>, scalar_prefetch = 0 : i64, scratch_operands = 0 : i64, tpu.core_type = #tpu.core_type<tc>, window_params = [{transform_indices = @transform_0, window_bounds = array<i64: 8, 256>}, {transform_indices = @transform_1, window_bounds = array<i64: 4, 256>}, {transform_indices = @transform_2, window_bounds = array<i64: 8, 256>}]} {
    %c0 = arith.constant 0 : index
    %c0_0 = arith.constant 0 : index
    %0 = vector.load %arg2[%c0, %c0_0] : memref<8x256xf32, #tpu.memory_space<vmem>>, vector<8x256xf32>
    %c0_1 = arith.constant 0 : index
    %c0_2 = arith.constant 0 : index
    %1 = vector.load %arg3[%c0_1, %c0_2] : memref<4x256xf32, #tpu.memory_space<vmem>>, vector<4x256xf32>
    %2 = tpu.concatenate %1, %1 in 0 : vector<4x256xf32>, vector<4x256xf32> -> vector<8x256xf32>
    %cst = arith.constant 0.000000e+00 : f32
    %3 = vector.broadcast %cst : f32 to vector<8x256xf32>
    %4 = arith.minimumf %0, %3 : vector<8x256xf32>
    %5 = arith.mulf %2, %4 : vector<8x256xf32>
    %6 = arith.subf %0, %5 : vector<8x256xf32>
    %c0_3 = arith.constant 0 : index
    %c0_4 = arith.constant 0 : index
    %7 = vector.load %arg4[%c0_3, %c0_4] : memref<8x256xf32, #tpu.memory_space<vmem>>, vector<8x256xf32>
    tpu.vector_store %arg4[%c0_3, %c0_4], %6 {strides = array<i32>} : memref<8x256xf32, #tpu.memory_space<vmem>>, vector<8x256xf32>,
    return
  }
  func.func @transform_0(%arg0: i32, %arg1: i32) -> (i32, i32) {
    %c0_i32 = arith.constant 0 : i32
    return %arg1, %arg0 : i32, i32
  }
  func.func @transform_1(%arg0: i32, %arg1: i32) -> (i32, i32) {
    %c0_i32 = arith.constant 0 : i32
    %c0_i32_0 = arith.constant 0 : i32
    return %c0_i32, %arg0 : i32, i32
  }
  func.func @transform_2(%arg0: i32, %arg1: i32) -> (i32, i32) {
    %c0_i32 = arith.constant 0 : i32
    return %arg1, %arg0 : i32, i32
  }
}

</mosaic_0001>

<bundles_post_ra>
// kernel: tpu_custom_call.1
= control target key start
LH: loop header
LB: loop body
LE: loop exit
PB: predicated region body
PF: predicated region fallthrough
CT: control target
= control target key end

     0   :  { %7 = vsyncpa [#allocation3], 0  ;;  %s202_s0 = inlined_call_operand.hbm [shape: f32[8,256], index: 0, kind: input, shape index: {}]   ;;  %s203_s1 = inlined_call_operand.hbm [shape: f32[4,256], index: 1, kind: input, shape index: {}]   ;;  %s204_s2 = inlined_call_operand.hbm [shape: f32[8,256], index: 2, kind: output, shape index: {}]  }
   0x1   :  { %8 = vsyncpa [#allocation6], 0 }
   0x2   :  { %9 = vsyncpa [#allocation4], 0  ;;  %s148_s9 = smov [#allocation2]   ;;  %s149_s11 = smov [#allocation5]  }
   0x3   :  { %s16_s10 = sshll.u32 %s148_s9, 4  ;;  %s26_s12 = sshll.u32 %s149_s11, 4  ;;  %s17_s10 = int_to_ptr.vmem [resolvable:$true] %s16_s10  ;;  %s27_s12 = int_to_ptr.vmem [resolvable:$true] %s26_s12 }
   0x4   :  { %s76_s15 = scalar_lea.hbm %s202_s0, 256 }
   0x5   :  { %p77_p0 = scmp.ne.s32.totalorder %s202_s0, %s76_s15  ;;  %p80_p1 = scmp.lt.u32.totalorder %s76_s15, %s202_s0 }
   0x7   :  { %p82_p2 = pnand %p80_p1, %p77_p0 }
   0x9   :  { %85 = shalt.err (!%p82_p2)
}
   0xa   :  { %s86_s20 = scalar_lea.vmem %s17_s10, 256  ;;  %p91_p4 = scmp.lt.s32.totalorder %s17_s10, %s17_s10 }
   0xb   :  { %p87_p3 = scmp.ne.s32.totalorder %s17_s10, %s86_s20  ;;  %p92_p5 = scmp.lt.s32.totalorder %s86_s20, %s86_s20 }
   0xd   :  { %p93_p6 = por %p92_p5, %p91_p4 }
   0xf   :  { %p94_p7 = pnand %p93_p6, %p87_p3 }
  0x11   :  { %97 = shalt.err (!%p94_p7)
}
  0x12   :  { %19 = dma.hbm_to_vmem [thread:$0]  %s202_s0, 256, %s17_s10, [#allocation3]  }
  0x13   :  { %s98_s25 = scalar_lea.hbm %s203_s1, 128 }
  0x14   :  { %p99_p8 = scmp.ne.s32.totalorder %s203_s1, %s98_s25  ;;  %p102_p9 = scmp.lt.u32.totalorder %s98_s25, %s203_s1 }
  0x16   :  { %p104_p10 = pnand %p102_p9, %p99_p8 }
  0x18   :  { %107 = shalt.err (!%p104_p10)
}
  0x19   :  { %s108_s30 = scalar_lea.vmem %s27_s12, 128  ;;  %p113_p12 = scmp.lt.s32.totalorder %s27_s12, %s27_s12 }
  0x1a   :  { %p109_p11 = scmp.ne.s32.totalorder %s27_s12, %s108_s30  ;;  %p114_p13 = scmp.lt.s32.totalorder %s108_s30, %s108_s30 }
  0x1c   :  { %p115_p0 = por %p114_p13, %p113_p12 }
  0x1e   :  { %p116_p1 = pnand %p115_p0, %p109_p11 }
  0x20   :  { %119 = shalt.err (!%p116_p1)
}
  0x21   :  { %29 = dma.hbm_to_vmem [thread:$0]  %s203_s1, 128, %s27_s12, [#allocation6]  }
  0x22   :  { %142 = dma.done.wait [#allocation3], 256  }
  0x23   :  { %143 = vsyncadd [#allocation3], 4294967040 }
  0x24   :  { %144 = dma.done.wait [#allocation6], 128  }
  0x25   :  { %145 = vsyncadd [#allocation6], 4294967168  ;;  %v36_v0 = vld [vmem:[#allocation2] sm:$0xff]  ;;  %v38_v1 = vld [vmem:[#allocation5] sm:$0xff]  ;;  %vm44_vm0 = vcmask 1043456   ;;  %s150_s4 = smov [#allocation7]  }
  0x26   :  { %v37_v2 = vld [vmem:[#allocation2 + $0x8] sm:$0xff]  ;;  %v42_v3 = vcombine.low %v38_v1, %v38_v1  ;;  %v47_v4 = vmin.f32 %v36_v0, 0.0  ;;  %v40_v5 = vcombine.high %v38_v1, %v38_v1  ;;  %s61_s5 = sshll.u32 %s150_s4, 4  ;;  %s62_s5 = int_to_ptr.vmem [resolvable:$true] %s61_s5 }
  0x27   :  { %v48_v6 = vmin.f32 %v37_v2, 0.0  ;;  %s120_s1 = scalar_lea.vmem %s62_s5, 256  ;;  %p125_p3 = scmp.lt.s32.totalorder %s62_s5, %s62_s5 }
  0x28   :  { %v45_v7 = vsel %vm44_vm0, %v38_v1, %v42_v3  ;;  %v46_v8 = vsel %vm44_vm0, %v40_v5, %v38_v1  ;;  %p121_p2 = scmp.ne.s32.totalorder %s62_s5, %s120_s1  ;;  %p126_p4 = scmp.lt.s32.totalorder %s120_s1, %s120_s1 }
  0x29   :  { %v49_v9 = vmul.f32 %v47_v4, %v45_v7  ;;  %v50_v10 = vmul.f32 %v48_v6, %v46_v8 }
  0x2a   :  { %p127_p5 = por %p126_p4, %p125_p3 }
  0x2b   :  { %v51_v11 = vsub.f32 %v36_v0, %v49_v9  ;;  %v52_v12 = vsub.f32 %v37_v2, %v50_v10 }
  0x2c   :  { %p128_p6 = pnand %p127_p5, %p121_p2 }
  0x2d   :  { %53 = vst [vmem:[#allocation7] sm:$0xff] %v51_v11  ;;  %54 = vst [vmem:[#allocation7 + $0x8] sm:$0xff] %v52_v12 }
  0x2e   :  { %131 = shalt.err (!%p128_p6)
}
  0x2f   :  { %s132_s8 = scalar_lea.hbm %s204_s2, 256 }
  0x30   :  { %p133_p7 = scmp.ne.s32.totalorder %s204_s2, %s132_s8  ;;  %p136_p8 = scmp.lt.u32.totalorder %s132_s8, %s204_s2 }
  0x32   :  { %p138_p9 = pnand %p136_p8, %p133_p7 }
  0x34   :  { %141 = shalt.err (!%p138_p9)
}
  0x35   :  { %64 = dma.vmem_to_hbm [thread:$0]  %s62_s5, 256, %s204_s2, [#allocation4]  }
  0x36   :  { %146 = dma.done.wait [#allocation4], 256  }
  0x37   :  { %147 = vsyncadd [#allocation4], 4294967040 }
  0x38   :  { %68 = vsyncpa [#allocation3], 1 }
  0x39   :  { %69 = vsyncpa [#allocation6], 1 }
  0x3a   :  { %70 = vsyncpa [#allocation4], 1 }

</bundles_post_ra>
